<compile_context>
chip_gen: v7x
topology: tpu7x:2x2x1
jax: 0.10.0
libtpu: 0.0.40
codegen_flags: <defaults>
</compile_context>

<pallas_src>
import functools

import jax
import jax.numpy as jnp
from jax.experimental import pallas as pl
from jax.experimental.pallas import tpu as pltpu

# TODO(synk): the SentenceTransformer encoder (self.model) has no Pallas
# equivalent here; embeddings are taken as inputs.

_EPS = 1e-8  # torch.nn.functional.cosine_similarity default eps
_LANE = 128


def _round_up(x, m):
    return ((x + m - 1) // m) * m


def _tpu_config():
    """Generation-aware VMEM budget / compiler limits / compute policy."""
    kind = ""
    try:
        kind = jax.devices()[0].device_kind.lower()
    except Exception:  # non-TPU or exotic backend: fall through to conservative
        pass
    if "v7" in kind:
        # 64 MiB physical VMEM per TC, 32 MiB default scoped; 2 TensorCores.
        return dict(name="v7x", total_budget=24 << 20,
                    vmem_limit_bytes=32 << 20,
                    bf16_valu=True, force_multi_tile=True)
    if "v6" in kind:
        # 128 MiB physical, 32 MiB default scoped -> raise limit, bigger tiles.
        return dict(name="v6e", total_budget=28 << 20,
                    vmem_limit_bytes=48 << 20,
                    bf16_valu=True, force_multi_tile=False)
    # v5e / v5p / v4 / unknown: stay under the 16 MiB default scoped VMEM,
    # keep f32 math (no bf16 VALU on v5e).
    return dict(name="v5e", total_budget=13 << 20,
                vmem_limit_bytes=None,
                bf16_valu=False, force_multi_tile=False)


def _cosine_mse_partial_kernel(a_ref, b_ref, y_ref, out_ref, *,
                               batch_size, tile_rows, need_mask,
                               mul_in_input_dtype):
    # a_ref/b_ref: [TB, D], y_ref: [TB, 1], out_ref: [1, 1, 128]
    a = a_ref[...]
    b = b_ref[...]
    y = y_ref[...].astype(jnp.float32)

    if mul_in_input_dtype:
        # bf16-VALU chips (v6e/v7x): multiply in the narrow input dtype and
        # accumulate the row reductions in f32 -> no whole-tile f32 temps.
        dot = jnp.sum(a * b, axis=-1, keepdims=True, dtype=jnp.float32)
        na2 = jnp.sum(a * a, axis=-1, keepdims=True, dtype=jnp.float32)
        nb2 = jnp.sum(b * b, axis=-1, keepdims=True, dtype=jnp.float32)
    else:
        # v5e / f32 inputs: per-expression f32 math (exact torch semantics).
        af = a.astype(jnp.float32)
        bf = b.astype(jnp.float32)
        dot = jnp.sum(af * bf, axis=-1, keepdims=True)           # [TB, 1]
        na2 = jnp.sum(af * af, axis=-1, keepdims=True)           # [TB, 1]
        nb2 = jnp.sum(bf * bf, axis=-1, keepdims=True)           # [TB, 1]

    # current torch semantics: clamp the *product* of the squared norms.
    denom = jnp.sqrt(jnp.maximum(na2 * nb2, jnp.float32(_EPS * _EPS)))
    cos = dot / denom                                            # [TB, 1]

    diff = cos - y
    sq = diff * diff                                             # [TB, 1]

    if need_mask:
        # Mask padded tail rows (garbage padding -> possible NaN rows).
        rows = jax.lax.broadcasted_iota(jnp.int32, sq.shape, 0)
        global_rows = pl.program_id(0) * tile_rows + rows
        sq = jnp.where(global_rows < batch_size, sq, 0.0)

    partial = jnp.sum(sq)                                        # scalar
    # Lane-dense 128-wide store of the per-tile partial sum.
    out_ref[...] = jnp.broadcast_to(partial, out_ref.shape).astype(jnp.float32)


def _pick_tile_rows(batch, hidden, in_itemsize, cfg):
    """Rows per tile under the per-generation double-buffered VMEM budget."""
    d_pad = _round_up(hidden, _LANE)                 # lane padding of D
    # sublane packing: f32 -> 8, bf16 -> 16, int8/fp8 -> 32 rows
    align = {1: 32, 2: 16}.get(in_itemsize, 8)
    # per-row VMEM bytes per buffer: two embedding tiles + padded f32 labels
    per_row = 2 * d_pad * in_itemsize + _LANE * 4
    n_buf = 2                                        # default double-buffering
    tb = cfg["total_budget"] // (n_buf * per_row)
    tb = max(align, (tb // align) * align)

    if cfg["force_multi_tile"]:
        # v7x: never collapse to one grid step -- both TCs should get tiles.
        half = _round_up(pl.cdiv(batch, 2), align)
        if half < batch:
            tb = min(tb, half)
            nt = pl.cdiv(batch, tb)
            if nt % 2 == 1:
                # Prefer an even tile count so no lone tail tile serializes
                # on a single core.
                tb2 = max(align, _round_up(pl.cdiv(batch, nt + 1), align))
                if pl.cdiv(batch, tb2) % 2 == 0:
                    tb = tb2

    if tb >= batch:
        return batch                                 # single full block
    return tb


def cosine_similarity_loss(rep_a, rep_b, labels, *, tile_rows=None):
    """rep_a, rep_b: [B, D] (f32 or bf16); labels: [B] or [B,1]. Scalar f32."""
    B, D = rep_a.shape
    cfg = _tpu_config()
    labels2d = labels.reshape(B, 1).astype(jnp.float32)

    itemsize = max(jnp.dtype(rep_a.dtype).itemsize,
                   jnp.dtype(rep_b.dtype).itemsize)
    if tile_rows is None:
        tb = _pick_tile_rows(B, D, itemsize, cfg)
    else:
        tb = min(int(tile_rows), B)
        if tb < B:
            assert tb % 8 == 0, "tile_rows must be a multiple of 8 when tiling"

    num_tiles = pl.cdiv(B, tb)
    need_mask = (B % tb) != 0
    mul_in_input_dtype = (cfg["bf16_valu"] and itemsize < 4
                          and rep_a.dtype == rep_b.dtype)

    kernel = functools.partial(
        _cosine_mse_partial_kernel,
        batch_size=B, tile_rows=tb, need_mask=need_mask,
        mul_in_input_dtype=mul_in_input_dtype)

    compiler_kwargs = dict(
        # Independent per-tile partials -> parallel axis (megacore on v7x).
        dimension_semantics=("parallel",),
    )
    if cfg["vmem_limit_bytes"] is not None:
        compiler_kwargs["vmem_limit_bytes"] = cfg["vmem_limit_bytes"]

    partials = pl.pallas_call(
        kernel,
        out_shape=jax.ShapeDtypeStruct((num_tiles, 1, _LANE), jnp.float32),
        grid_spec=pltpu.PrefetchScalarGridSpec(
            num_scalar_prefetch=0,
            grid=(num_tiles,),
            in_specs=[
                pl.BlockSpec((tb, D), lambda i: (i, 0)),
                pl.BlockSpec((tb, D), lambda i: (i, 0)),
                pl.BlockSpec((tb, 1), lambda i: (i, 0)),
            ],
            out_specs=pl.BlockSpec((1, 1, _LANE), lambda i: (i, 0, 0)),
        ),
        compiler_params=pltpu.CompilerParams(**compiler_kwargs),
    )(rep_a, rep_b, labels2d)

    # Tiny final reduction + mean in plain JAX.
    return jnp.sum(partials[:, 0, 0]) / jnp.float32(B)


def _reference_loss(rep_a, rep_b, labels):
    a = rep_a.astype(jnp.float32)
    b = rep_b.astype(jnp.float32)
    dot = jnp.sum(a * b, axis=-1)
    na2 = jnp.sum(a * a, axis=-1)
    nb2 = jnp.sum(b * b, axis=-1)
    cos = dot / jnp.sqrt(jnp.maximum(na2 * nb2, _EPS * _EPS))
    return jnp.mean((cos - labels.reshape(-1).astype(jnp.float32)) ** 2)


if __name__ == "__main__":
    key = jax.random.PRNGKey(0)
    k_a, k_b, k_y, k_a2, k_b2, k_y2 = jax.random.split(key, 6)

    # --- case 1: small batch, f32, auto tile path (single block) -----------
    B, D = 8, 32
    rep_a = jax.random.normal(k_a, (B, D), dtype=jnp.float32)
    rep_b = jax.random.normal(k_b, (B, D), dtype=jnp.float32)
    labels = jax.random.uniform(k_y, (B,), minval=-1.0, maxval=1.0,
                                dtype=jnp.float32)

    loss = cosine_similarity_loss(rep_a, rep_b, labels)
    jax.block_until_ready(loss)
    ref = _reference_loss(rep_a, rep_b, labels)
    assert jnp.allclose(loss, ref, rtol=1e-5, atol=1e-6), (loss, ref)

    # --- case 2: forced tiling + masked tail + bf16 streaming --------------
    B2, D2 = 20, 32
    rep_a2 = jax.random.normal(k_a2, (B2, D2), dtype=jnp.float32)
    rep_b2 = jax.random.normal(k_b2, (B2, D2), dtype=jnp.float32)
    labels2 = jax.random.uniform(k_y2, (B2,), minval=-1.0, maxval=1.0,
                                 dtype=jnp.float32)

    loss2 = cosine_similarity_loss(rep_a2.astype(jnp.bfloat16),
                                   rep_b2.astype(jnp.bfloat16),
                                   labels2, tile_rows=16)   # 2 tiles, masked tail
    jax.block_until_ready(loss2)
    ref2 = _reference_loss(rep_a2.astype(jnp.bfloat16),
                           rep_b2.astype(jnp.bfloat16), labels2)
    # bf16 products on v6e/v7x differ slightly from the f32 reference math.
    assert jnp.allclose(loss2, ref2, rtol=5e-2, atol=5e-3), (loss2, ref2)

    # --- case 3: forced tiling + masked tail, f32 exact path ----------------
    loss3 = cosine_similarity_loss(rep_a2, rep_b2, labels2, tile_rows=8)
    jax.block_until_ready(loss3)
    ref3 = _reference_loss(rep_a2, rep_b2, labels2)
    assert jnp.allclose(loss3, ref3, rtol=1e-5, atol=1e-6), (loss3, ref3)

    print("KERNEL_OK")
</pallas_src>

<mosaic_0001>
module attributes {stable_mosaic.version = 11 : i64} {
  func.func @_cosine_mse_partial_kernel(%arg0: i32, %arg1: memref<8x32xf32, #tpu.memory_space<vmem>>, %arg2: memref<8x32xf32, #tpu.memory_space<vmem>>, %arg3: memref<8x1xf32, #tpu.memory_space<vmem>>, %arg4: memref<1x1x128xf32, #tpu.memory_space<vmem>>) attributes {dimension_semantics = [#tpu.dimension_semantics<parallel>], iteration_bounds = array<i64: 1>, scalar_prefetch = 0 : i64, scratch_operands = 0 : i64, tpu.core_type = #tpu.core_type<tc>, window_params = [{transform_indices = @transform_0, window_bounds = array<i64: 8, 32>}, {transform_indices = @transform_1, window_bounds = array<i64: 8, 32>}, {transform_indices = @transform_2, window_bounds = array<i64: 8, 1>}, {transform_indices = @transform_3, window_bounds = array<i64: 1, 1, 128>}]} {
    %c0 = arith.constant 0 : index
    %c0_0 = arith.constant 0 : index
    %0 = vector.load %arg1[%c0, %c0_0] : memref<8x32xf32, #tpu.memory_space<vmem>>, vector<8x32xf32>
    %c0_1 = arith.constant 0 : index
    %c0_2 = arith.constant 0 : index
    %1 = vector.load %arg2[%c0_1, %c0_2] : memref<8x32xf32, #tpu.memory_space<vmem>>, vector<8x32xf32>
    %c0_3 = arith.constant 0 : index
    %c0_4 = arith.constant 0 : index
    %2 = vector.load %arg3[%c0_3, %c0_4] : memref<8x1xf32, #tpu.memory_space<vmem>>, vector<8x1xf32>
    %3 = arith.mulf %0, %1 : vector<8x32xf32>
    %cst = arith.constant dense<0.000000e+00> : vector<8xf32>
    %4 = vector.multi_reduction <add>, %3, %cst [1] : vector<8x32xf32> to vector<8xf32>
    %5 = vector.shape_cast %4 : vector<8xf32> to vector<8x1xf32>
    %6 = arith.mulf %0, %0 : vector<8x32xf32>
    %cst_5 = arith.constant dense<0.000000e+00> : vector<8xf32>
    %7 = vector.multi_reduction <add>, %6, %cst_5 [1] : vector<8x32xf32> to vector<8xf32>
    %8 = vector.shape_cast %7 : vector<8xf32> to vector<8x1xf32>
    %9 = arith.mulf %1, %1 : vector<8x32xf32>
    %cst_6 = arith.constant dense<0.000000e+00> : vector<8xf32>
    %10 = vector.multi_reduction <add>, %9, %cst_6 [1] : vector<8x32xf32> to vector<8xf32>
    %11 = vector.shape_cast %10 : vector<8xf32> to vector<8x1xf32>
    %12 = arith.mulf %8, %11 : vector<8x1xf32>
    %cst_7 = arith.constant 1.000000e-16 : f32
    %13 = vector.broadcast %cst_7 : f32 to vector<8x1xf32>
    %14 = arith.maximumf %12, %13 : vector<8x1xf32>
    %15 = math.sqrt %14 : vector<8x1xf32>
    %16 = arith.divf %5, %15 : vector<8x1xf32>
    %17 = arith.subf %16, %2 : vector<8x1xf32>
    %18 = arith.mulf %17, %17 : vector<8x1xf32>
    %19 = vector.shape_cast %18 : vector<8x1xf32> to vector<1x8x1xf32>
    %cst_8 = arith.constant dense<0.000000e+00> : vector<1xf32>
    %20 = vector.multi_reduction <add>, %19, %cst_8 [1, 2] : vector<1x8x1xf32> to vector<1xf32>
    %21 = vector.shape_cast %20 : vector<1xf32> to vector<1x1x1xf32>
    %22 = vector.extract %21[0, 0, 0] : f32 from vector<1x1x1xf32>
    %23 = vector.broadcast %22 : f32 to vector<1x1x128xf32>
    %c0_9 = arith.constant 0 : index
    %c0_10 = arith.constant 0 : index
    %c0_11 = arith.constant 0 : index
    %24 = vector.load %arg4[%c0_9, %c0_10, %c0_11] : memref<1x1x128xf32, #tpu.memory_space<vmem>>, vector<1x1x128xf32>
    tpu.vector_store %arg4[%c0_9, %c0_10, %c0_11], %23 {strides = array<i32>} : memref<1x1x128xf32, #tpu.memory_space<vmem>>, vector<1x1x128xf32>,
    return
  }
  func.func @transform_0(%arg0: i32) -> (i32, i32) {
    %c0_i32 = arith.constant 0 : i32
    %c0_i32_0 = arith.constant 0 : i32
    return %arg0, %c0_i32 : i32, i32
  }
  func.func @transform_1(%arg0: i32) -> (i32, i32) {
    %c0_i32 = arith.constant 0 : i32
    %c0_i32_0 = arith.constant 0 : i32
    return %arg0, %c0_i32 : i32, i32
  }
  func.func @transform_2(%arg0: i32) -> (i32, i32) {
    %c0_i32 = arith.constant 0 : i32
    %c0_i32_0 = arith.constant 0 : i32
    return %arg0, %c0_i32 : i32, i32
  }
  func.func @transform_3(%arg0: i32) -> (i32, i32, i32) {
    %c0_i32 = arith.constant 0 : i32
    %c0_i32_0 = arith.constant 0 : i32
    %c0_i32_1 = arith.constant 0 : i32
    return %arg0, %c0_i32, %c0_i32_0 : i32, i32, i32
  }
}

</mosaic_0001>

<bundles_post_ra>
// kernel: tpu_custom_call.1
= control target key start
LH: loop header
LB: loop body
LE: loop exit
PB: predicated region body
PF: predicated region fallthrough
CT: control target
= control target key end

     0   :  { %8 = vsyncpa [#allocation3], 0  ;;  %s192_s0 = inlined_call_operand.vmem [shape: f32[8,32], index: 0, kind: input, shape index: {}]   ;;  %s193_s1 = inlined_call_operand.hbm [shape: f32[8,32], index: 1, kind: input, shape index: {}]   ;;  %s194_s2 = inlined_call_operand.vmem [shape: f32[8,1], index: 2, kind: input, shape index: {}]   ;;  %s195_s3 = inlined_call_operand.hbm [shape: f32[1,1,128], index: 3, kind: output, shape index: {}]  }
   0x1   :  { %9 = vsyncpa [#allocation4], 0  ;;  %s140_s12 = smov [#allocation2]   ;;  %s92_s16 = scalar_lea.hbm %s193_s1, 128 }
   0x2   :  { %s18_s13 = sshll.u32 %s140_s12, 4  ;;  %p93_p0 = scmp.ne.s32.totalorder %s193_s1, %s92_s16  ;;  %s19_s13 = int_to_ptr.vmem [resolvable:$true] %s18_s13 }
   0x3   :  { %p96_p1 = scmp.lt.u32.totalorder %s92_s16, %s193_s1 }
   0x5   :  { %p98_p2 = pnand %p96_p1, %p93_p0 }
   0x7   :  { %101 = shalt.err (!%p98_p2)
}
   0x8   :  { %s102_s21 = scalar_lea.vmem %s19_s13, 128  ;;  %p107_p4 = scmp.lt.s32.totalorder %s19_s13, %s19_s13 }
   0x9   :  { %p103_p3 = scmp.ne.s32.totalorder %s19_s13, %s102_s21  ;;  %p108_p5 = scmp.lt.s32.totalorder %s102_s21, %s102_s21 }
   0xb   :  { %p109_p6 = por %p108_p5, %p107_p4 }
   0xd   :  { %p110_p7 = pnand %p109_p6, %p103_p3 }
   0xf   :  { %113 = shalt.err (!%p110_p7)
}
  0x10   :  { %21 = dma.hbm_to_vmem [thread:$0]  %s193_s1, 128, %s19_s13, [#allocation3]  }
  0x11   :  { %136 = dma.done.wait [#allocation3], 128  }
  0x12   :  { %137 = vsyncadd [#allocation3], 4294967168  ;;  %v27_v0 = vld [vmem:[%s192_s0] sm:$0xff]  ;;  %vm31_vm0 = vcmask 261120   ;;  %vm56_vm3 = vcmask 7168   ;;  %s141_s26 = smov [#allocation5]  }
  0x13   :  { %v28_v1 = vld [vmem:[#allocation2] sm:$0xff]  ;;  %v35_v2 = vmul.f32 %v27_v0, %v27_v0  ;;  %s75_s27 = sshll.u32 %s141_s26, 4  ;;  %s76_s27 = int_to_ptr.vmem [resolvable:$true] %s75_s27 }
  0x14   :  { %v39_v3 = vmul.f32 %v28_v1, %v28_v1  ;;  %v30_v4 = vmul.f32 %v28_v1, %v27_v0  ;;  %v29_v19 = vld [vmem:[%s194_s2] sm:$0xff]  ;;  %s114_s2 = scalar_lea.vmem %s76_s27, 16  ;;  %s118_s29 = scalar_lea.vmem %s76_s27, 32 }
  0x15   :  { %v36_v5 = vsel %vm31_vm0, %v35_v2, 0.0  ;;  %p115_p8 = scmp.ne.s32.totalorder %s76_s27, %s114_s2  ;;  %p119_p9 = scmp.lt.s32.totalorder %s76_s27, %s76_s27 }
  0x16   :  { %v32_v6 = vsel %vm31_vm0, %v30_v4, 0.0  ;;  %37 = vadd.xlane.f32.xlu0 %v36_v5  ;;  %v40_v7 = vsel %vm31_vm0, %v39_v3, 0.0  ;;  %p120_p10 = scmp.lt.s32.totalorder %s118_s29, %s114_s2 }
  0x17   :  { %33 = vadd.xlane.f32.xlu1 %v32_v6 }
  0x18   :  { %p121_p11 = por %p120_p10, %p119_p9 }
  0x1a   :  { %41 = vadd.xlane.f32.xlu0 %v40_v7  ;;  %p122_p12 = pnand %p121_p11, %p115_p8 }
  0xa3   :  { %v38_v8 = vpop.xlane.xlu0 %37 }
  0xa4   :  { %v34_v17 = vpop.xlane.xlu1 %33 }
  0xa7   :  { %v42_v9 = vpop.xlane.xlu0 %41 }
  0xa8   :  { %v43_v10 = vmul.f32 %v42_v9, %v38_v8 }
  0xaa   :  { %v44_v11 = vmax.f32 %v43_v10, 1e-16 }
  0xac   :  { %88 = vrsqrt.f32 %v44_v11  ;;  %vm47_vm1 = vcmp.eq.f32.partialorder %v44_v11, inf  ;;  %v50_v14 = vand.u32 2147483648, %v44_v11  ;;  %vm49_vm2 = vcmp.eq.f32.partialorder %v44_v11, 0.0 }
  0xb6   :  { %v89_v12 = vpop.eup %88 }
  0xb7   :  { %v46_v13 = vmul.f32 %v89_v12, %v44_v11 }
  0xb9   :  { %v48_v15 = vsel %vm47_vm1, %v44_v11, %v46_v13 }
  0xba   :  { %v51_v16 = vsel %vm49_vm2, %v50_v14, %v48_v15 }
  0xbb   :  { %90 = vrcp.f32 %v51_v16 }
  0xc5   :  { %v91_v18 = vpop.eup %90 }
  0xc6   :  { %v53_v20 = vmul.f32 %v91_v18, %v34_v17 }
  0xc8   :  { %v54_v21 = vsub.f32 %v53_v20, %v29_v19 }
  0xca   :  { %v55_v22 = vmul.f32 %v54_v21, %v54_v21 }
  0xcc   :  { %v57_v23 = vsel %vm56_vm3, %v55_v22, 0.0 }
  0xcd   :  { %58 = vadd.xlane.f32.xlu1 %v57_v23 }
 0x15a   :  { %v59_v24 = vpop.xlane.xlu1 %58 }
 0x15b   :  { %v60_v25 = vrot.slane %v59_v24, 4 }
 0x15d   :  { %v61_v26 = vadd.f32 %v60_v25, %v59_v24 }
 0x15f   :  { %v62_v27 = vrot.slane %v61_v26, 2 }
 0x161   :  { %v63_v28 = vadd.f32 %v62_v27, %v61_v26 }
 0x163   :  { %v64_v29 = vrot.slane %v63_v28, 1 }
 0x165   :  { %v65_v30 = vadd.f32 %v64_v29, %v63_v28 }
 0x167   :  { %84 = vpush %v65_v30 }
 0x198   :  { %s85_s28 = spop %84 }
 0x199   :  { %v67_v31 = vstv %s85_s28 }
 0x19a   :  { %68 = vst [vmem:[#allocation5] sm:$0x1] %v67_v31 }
 0x19b   :  { %125 = shalt.err (!%p122_p12)
}
 0x19c   :  { %s126_s5 = scalar_lea.hbm %s195_s3, 16 }
 0x19d   :  { %p127_p13 = scmp.ne.s32.totalorder %s195_s3, %s126_s5  ;;  %p130_p0 = scmp.lt.u32.totalorder %s126_s5, %s195_s3 }
 0x19f   :  { %p132_p1 = pnand %p130_p0, %p127_p13 }
 0x1a1   :  { %135 = shalt.err (!%p132_p1)
}
 0x1a2   :  { %78 = dma.vmem_to_hbm [thread:$0]  %s76_s27, 16, %s195_s3, [#allocation4]  }
 0x1a3   :  { %138 = dma.done.wait [#allocation4], 16  }
 0x1a4   :  { %139 = vsyncadd [#allocation4], 4294967280 }
 0x1a5   :  { %82 = vsyncpa [#allocation3], 1 }
 0x1a6   :  { %83 = vsyncpa [#allocation4], 1 }

</bundles_post_ra>
